<compile_context>
chip_gen: v7x
topology: tpu7x:2x2x1
jax: 0.10.0
libtpu: 0.0.40
codegen_flags: <defaults>
</compile_context>

<pallas_src>
import functools

import jax
import jax.numpy as jnp
from jax.experimental import pallas as pl
from jax.experimental.pallas import tpu as pltpu


def _scale_bias_clamp_kernel(x_ref, w_ref, b_ref, o_ref, *, cout, hw,
                             min_value, max_value):
    # x_ref: (N, HW) in VMEM (lane-dense), w_ref/b_ref: (Cout,) in SMEM,
    # o_ref: (N, Cout*HW) in VMEM (lane-dense).
    x = x_ref[...]
    for co in range(cout):                      # static unroll, cout == 4
        y = x * w_ref[co] + b_ref[co]           # VPU scale + bias (SMEM scalars)
        y = jnp.maximum(y, min_value)           # torch.clamp_min
        y = jnp.minimum(y, max_value)           # torch.clamp_max
        # Static, lane-aligned slice (co*HW is a multiple of 128 here) ->
        # unmasked dense vector stores.
        o_ref[:, co * hw:(co + 1) * hw] = y.astype(o_ref.dtype)


def conv_transpose_1x1_clamp(x_nchw, weight, bias, min_value=0.34,
                             max_value=0.52):
    """x_nchw: (N, 1, H, W); weight: (1, Cout, 1, 1); bias: (Cout,)."""
    n, cin, h, w = x_nchw.shape
    assert cin == 1, "specialized path assumes Cin == 1 (as in the module)"
    cout = weight.shape[1]
    hw = h * w

    # Free reshapes: no data movement, no transposes.
    x_flat = x_nchw.reshape(n, hw)          # flattened NCHW (Cin == 1)
    w_vec = weight.reshape(cout)            # (Cout,)
    b_vec = bias.reshape(cout)              # (Cout,)

    kernel = functools.partial(
        _scale_bias_clamp_kernel,
        cout=cout, hw=hw, min_value=min_value, max_value=max_value,
    )

    # TODO(synk): for realistic N*H*W sizes, tile the row dim (grid over N
    # chunks, dimension_semantics=("parallel",)) instead of one full block.
    out_flat = pl.pallas_call(
        kernel,
        out_shape=jax.ShapeDtypeStruct((n, cout * hw), x_flat.dtype),
        grid_spec=pl.GridSpec(
            grid=(1,),
            in_specs=[
                pl.BlockSpec((n, hw), lambda i: (0, 0)),
                pl.BlockSpec(memory_space=pltpu.MemorySpace.SMEM),
                pl.BlockSpec(memory_space=pltpu.MemorySpace.SMEM),
            ],
            out_specs=pl.BlockSpec((n, cout * hw), lambda i: (0, 0)),
        ),
        compiler_params=pltpu.CompilerParams(
            dimension_semantics=("arbitrary",),
        ),
        cost_estimate=pl.CostEstimate(
            flops=2 * n * hw * cout,
            transcendentals=0,
            bytes_accessed=4 * (n * hw + 2 * cout + n * cout * hw),
        ),
    )(x_flat, w_vec, b_vec)

    # (N, Cout*HW) -> (N, Cout, H, W): a pure reshape, no transpose needed.
    return out_flat.reshape(n, cout, h, w)


if __name__ == "__main__":
    key = jax.random.PRNGKey(0)
    k_x, k_w, k_b = jax.random.split(key, 3)

    # Module shapes: ConvTranspose2d(in=1, out=4, kernel=1) ->
    #   weight (1, 4, 1, 1), bias (4,)
    N, CIN, COUT, H, W = 2, 1, 4, 16, 16
    x = jax.random.normal(k_x, (N, CIN, H, W), dtype=jnp.float32)
    weight = jax.random.normal(k_w, (CIN, COUT, 1, 1), dtype=jnp.float32) * 0.5
    bias = jax.random.normal(k_b, (COUT,), dtype=jnp.float32) * 0.1

    out = conv_transpose_1x1_clamp(x, weight, bias,
                                   min_value=0.34, max_value=0.52)
    out = jax.block_until_ready(out)

    # Sanity check against a plain-JAX reference.
    ref = jnp.einsum("nchw,cohw->nohw", x, weight) + bias[None, :, None, None]
    ref = jnp.clip(ref, 0.34, 0.52)
    assert out.shape == (N, COUT, H, W)
    assert jnp.allclose(out, ref, atol=1e-5), "mismatch vs reference"

    print("KERNEL_OK")
</pallas_src>

<mosaic_0001>
module attributes {stable_mosaic.version = 11 : i64} {
  func.func @_scale_bias_clamp_kernel(%arg0: i32, %arg1: memref<2x256xf32, #tpu.memory_space<vmem>>, %arg2: memref<4xf32, #tpu.memory_space<smem>>, %arg3: memref<4xf32, #tpu.memory_space<smem>>, %arg4: memref<2x1024xf32, #tpu.memory_space<vmem>>) attributes {dimension_semantics = [#tpu.dimension_semantics<arbitrary>], iteration_bounds = array<i64: 1>, scalar_prefetch = 0 : i64, scratch_operands = 0 : i64, tpu.core_type = #tpu.core_type<tc>, window_params = [{pipeline_mode = #tpu.pipeline_mode<synchronous>, transform_indices = @transform_0, window_bounds = array<i64: 2, 256>}, {transform_indices = @transform_1, window_bounds = array<i64: 4>}, {transform_indices = @transform_2, window_bounds = array<i64: 4>}, {pipeline_mode = #tpu.pipeline_mode<synchronous>, transform_indices = @transform_3, window_bounds = array<i64: 2, 1024>}]} {
    %c0 = arith.constant 0 : index
    %c0_0 = arith.constant 0 : index
    %0 = vector.load %arg1[%c0, %c0_0] : memref<2x256xf32, #tpu.memory_space<vmem>>, vector<2x256xf32>
    %c0_1 = arith.constant 0 : index
    %1 = memref.load %arg2[%c0_1] : memref<4xf32, #tpu.memory_space<smem>>
    %2 = vector.broadcast %1 : f32 to vector<2x256xf32>
    %3 = arith.mulf %0, %2 : vector<2x256xf32>
    %c0_2 = arith.constant 0 : index
    %4 = memref.load %arg3[%c0_2] : memref<4xf32, #tpu.memory_space<smem>>
    %5 = vector.broadcast %4 : f32 to vector<2x256xf32>
    %6 = arith.addf %3, %5 : vector<2x256xf32>
    %cst = arith.constant 3.400000e-01 : f32
    %7 = vector.broadcast %cst : f32 to vector<2x256xf32>
    %8 = arith.maximumf %6, %7 : vector<2x256xf32>
    %cst_3 = arith.constant 5.200000e-01 : f32
    %9 = vector.broadcast %cst_3 : f32 to vector<2x256xf32>
    %10 = arith.minimumf %8, %9 : vector<2x256xf32>
    %c0_4 = arith.constant 0 : index
    %c0_5 = arith.constant 0 : index
    %11 = vector.load %arg4[%c0_4, %c0_5] : memref<2x1024xf32, #tpu.memory_space<vmem>>, vector<2x256xf32>
    tpu.vector_store %arg4[%c0_4, %c0_5], %10 {strides = array<i32>} : memref<2x1024xf32, #tpu.memory_space<vmem>>, vector<2x256xf32>,
    %c1 = arith.constant 1 : index
    %12 = memref.load %arg2[%c1] : memref<4xf32, #tpu.memory_space<smem>>
    %13 = vector.broadcast %12 : f32 to vector<2x256xf32>
    %14 = arith.mulf %0, %13 : vector<2x256xf32>
    %c1_6 = arith.constant 1 : index
    %15 = memref.load %arg3[%c1_6] : memref<4xf32, #tpu.memory_space<smem>>
    %16 = vector.broadcast %15 : f32 to vector<2x256xf32>
    %17 = arith.addf %14, %16 : vector<2x256xf32>
    %cst_7 = arith.constant 3.400000e-01 : f32
    %18 = vector.broadcast %cst_7 : f32 to vector<2x256xf32>
    %19 = arith.maximumf %17, %18 : vector<2x256xf32>
    %cst_8 = arith.constant 5.200000e-01 : f32
    %20 = vector.broadcast %cst_8 : f32 to vector<2x256xf32>
    %21 = arith.minimumf %19, %20 : vector<2x256xf32>
    %c0_9 = arith.constant 0 : index
    %c256 = arith.constant 256 : index
    %22 = vector.load %arg4[%c0_9, %c256] : memref<2x1024xf32, #tpu.memory_space<vmem>>, vector<2x256xf32>
    tpu.vector_store %arg4[%c0_9, %c256], %21 {strides = array<i32>} : memref<2x1024xf32, #tpu.memory_space<vmem>>, vector<2x256xf32>,
    %c2 = arith.constant 2 : index
    %23 = memref.load %arg2[%c2] : memref<4xf32, #tpu.memory_space<smem>>
    %24 = vector.broadcast %23 : f32 to vector<2x256xf32>
    %25 = arith.mulf %0, %24 : vector<2x256xf32>
    %c2_10 = arith.constant 2 : index
    %26 = memref.load %arg3[%c2_10] : memref<4xf32, #tpu.memory_space<smem>>
    %27 = vector.broadcast %26 : f32 to vector<2x256xf32>
    %28 = arith.addf %25, %27 : vector<2x256xf32>
    %cst_11 = arith.constant 3.400000e-01 : f32
    %29 = vector.broadcast %cst_11 : f32 to vector<2x256xf32>
    %30 = arith.maximumf %28, %29 : vector<2x256xf32>
    %cst_12 = arith.constant 5.200000e-01 : f32
    %31 = vector.broadcast %cst_12 : f32 to vector<2x256xf32>
    %32 = arith.minimumf %30, %31 : vector<2x256xf32>
    %c0_13 = arith.constant 0 : index
    %c512 = arith.constant 512 : index
    %33 = vector.load %arg4[%c0_13, %c512] : memref<2x1024xf32, #tpu.memory_space<vmem>>, vector<2x256xf32>
    tpu.vector_store %arg4[%c0_13, %c512], %32 {strides = array<i32>} : memref<2x1024xf32, #tpu.memory_space<vmem>>, vector<2x256xf32>,
    %c3 = arith.constant 3 : index
    %34 = memref.load %arg2[%c3] : memref<4xf32, #tpu.memory_space<smem>>
    %35 = vector.broadcast %34 : f32 to vector<2x256xf32>
    %36 = arith.mulf %0, %35 : vector<2x256xf32>
    %c3_14 = arith.constant 3 : index
    %37 = memref.load %arg3[%c3_14] : memref<4xf32, #tpu.memory_space<smem>>
    %38 = vector.broadcast %37 : f32 to vector<2x256xf32>
    %39 = arith.addf %36, %38 : vector<2x256xf32>
    %cst_15 = arith.constant 3.400000e-01 : f32
    %40 = vector.broadcast %cst_15 : f32 to vector<2x256xf32>
    %41 = arith.maximumf %39, %40 : vector<2x256xf32>
    %cst_16 = arith.constant 5.200000e-01 : f32
    %42 = vector.broadcast %cst_16 : f32 to vector<2x256xf32>
    %43 = arith.minimumf %41, %42 : vector<2x256xf32>
    %c0_17 = arith.constant 0 : index
    %c768 = arith.constant 768 : index
    %44 = vector.load %arg4[%c0_17, %c768] : memref<2x1024xf32, #tpu.memory_space<vmem>>, vector<2x256xf32>
    tpu.vector_store %arg4[%c0_17, %c768], %43 {strides = array<i32>} : memref<2x1024xf32, #tpu.memory_space<vmem>>, vector<2x256xf32>,
    return
  }
  func.func @transform_0(%arg0: i32) -> (i32, i32) {
    %c0_i32 = arith.constant 0 : i32
    %c0_i32_0 = arith.constant 0 : i32
    %c0_i32_1 = arith.constant 0 : i32
    return %c0_i32, %c0_i32_0 : i32, i32
  }
  func.func @transform_1(%arg0: i32) -> i32 {
    %c0_i32 = arith.constant 0 : i32
    %c0_i32_0 = arith.constant 0 : i32
    return %c0_i32 : i32
  }
  func.func @transform_2(%arg0: i32) -> i32 {
    %c0_i32 = arith.constant 0 : i32
    %c0_i32_0 = arith.constant 0 : i32
    return %c0_i32 : i32
  }
  func.func @transform_3(%arg0: i32) -> (i32, i32) {
    %c0_i32 = arith.constant 0 : i32
    %c0_i32_0 = arith.constant 0 : i32
    %c0_i32_1 = arith.constant 0 : i32
    return %c0_i32, %c0_i32_0 : i32, i32
  }
}

</mosaic_0001>

<bundles_post_ra>
// kernel: tpu_custom_call.1
= control target key start
LH: loop header
LB: loop body
LE: loop exit
PB: predicated region body
PF: predicated region fallthrough
CT: control target
= control target key end

     0   :  { %8 = vsyncpa [#allocation3], 0  ;;  %s246_s0 = inlined_call_operand.hbm [shape: f32[2,256], index: 0, kind: input, shape index: {}]   ;;  %s247_s1 = inlined_call_operand.vmem [shape: f32[4], index: 1, kind: input, shape index: {}]   ;;  %s248_s2 = inlined_call_operand.vmem [shape: f32[4], index: 2, kind: input, shape index: {}]   ;;  %s249_s3 = inlined_call_operand.hbm [shape: f32[2,1024], index: 3, kind: output, shape index: {}]  }
   0x1   :  { %9 = vsyncpa [#allocation5], 0 }
   0x2   :  { %10 = vsyncpa [#allocation8], 0 }
   0x3   :  { %11 = vsyncpa [#allocation4], 0  ;;  %s28_s14 = sshll.u32 %s247_s1, 4  ;;  %s192_s15 = smov [#allocation2]   ;;  %s29_s14 = int_to_ptr.vmem [resolvable:$true] %s28_s14 }
   0x4   :  { %s18_s16 = sshll.u32 %s192_s15, 4  ;;  %s116_s19 = scalar_lea.hbm %s246_s0, 64  ;;  %s19_s16 = int_to_ptr.vmem [resolvable:$true] %s18_s16 }
   0x5   :  { %p117_p0 = scmp.ne.s32.totalorder %s246_s0, %s116_s19  ;;  %p120_p1 = scmp.lt.u32.totalorder %s116_s19, %s246_s0 }
   0x7   :  { %p122_p2 = pnand %p120_p1, %p117_p0 }
   0x9   :  { %125 = shalt.err (!%p122_p2)
}
   0xa   :  { %s126_s24 = scalar_lea.vmem %s19_s16, 64  ;;  %p131_p4 = scmp.lt.s32.totalorder %s19_s16, %s19_s16 }
   0xb   :  { %p127_p3 = scmp.ne.s32.totalorder %s19_s16, %s126_s24  ;;  %p132_p5 = scmp.lt.s32.totalorder %s126_s24, %s126_s24 }
   0xd   :  { %p133_p6 = por %p132_p5, %p131_p4 }
   0xf   :  { %p134_p7 = pnand %p133_p6, %p127_p3 }
  0x11   :  { %137 = shalt.err (!%p134_p7)
}
  0x12   :  { %21 = dma.hbm_to_vmem [thread:$0]  %s246_s0, 64, %s19_s16, [#allocation3]  }
  0x13   :  { %s138_s26 = scalar_lea.vmem %s29_s14, 16  ;;  %p143_p9 = scmp.lt.s32.totalorder %s29_s14, %s29_s14 }
  0x14   :  { %p139_p8 = scmp.ne.s32.totalorder %s29_s14, %s138_s26  ;;  %p144_p10 = scmp.lt.s32.totalorder %s138_s26, %s138_s26 }
  0x16   :  { %p145_p11 = por %p144_p10, %p143_p9 }
  0x18   :  { %p146_p12 = pnand %p145_p11, %p139_p8 }
  0x1a   :  { %149 = shalt.err (!%p146_p12)
}
  0x1b   :  { %s193_s27 = smov [#allocation6]   ;;  %s38_s30 = sshll.u32 %s248_s2, 4  ;;  %s39_s30 = int_to_ptr.vmem [resolvable:$true] %s38_s30 }
  0x1c   :  { %31 = dma.vmem_to_smem %s29_s14, 16, %s193_s27, [#allocation5]  }
  0x1d   :  { %s150_s4 = scalar_lea.vmem %s39_s30, 16  ;;  %p155_p0 = scmp.lt.s32.totalorder %s39_s30, %s39_s30 }
  0x1e   :  { %p151_p13 = scmp.ne.s32.totalorder %s39_s30, %s150_s4  ;;  %p156_p1 = scmp.lt.s32.totalorder %s150_s4, %s150_s4 }
  0x20   :  { %p157_p2 = por %p156_p1, %p155_p0 }
  0x22   :  { %p158_p3 = pnand %p157_p2, %p151_p13 }
  0x24   :  { %161 = shalt.err (!%p158_p3)
}
  0x25   :  { %s194_s0 = smov [#allocation7]  }
  0x26   :  { %41 = dma.vmem_to_smem %s39_s30, 16, %s194_s0, [#allocation8]  }
  0x27   :  { %184 = dma.done.wait [#allocation3], 64  }
  0x28   :  { %185 = vsyncadd [#allocation3], 4294967232 }
  0x29   :  { %186 = dma.done.wait [#allocation5], 16  }
  0x2a   :  { %187 = vsyncadd [#allocation5], 4294967280 }
  0x2b   :  { %188 = dma.done.wait [#allocation8], 16  }
  0x2c   :  { %189 = vsyncadd [#allocation8], 4294967280 }
  0x2d   :  { %51 = sfence }
  0x2e   :  { %s53_s5 = sld [smem:[#allocation6]]  ;;  %s106_s2 = sld [smem:[#allocation6 + $0x1]]  ;;  %v52_v0 = vld [vmem:[#allocation2] sm:$0xf] }
  0x2f   :  { %s56_s6 = sld [smem:[#allocation7]]  ;;  %s107_s7 = sld [smem:[#allocation7 + $0x1]] }
  0x30   :  { %s108_s8 = sld [smem:[#allocation6 + $0x2]]  ;;  %s110_s10 = sld [smem:[#allocation6 + $0x3]] }
  0x31   :  { %s109_s9 = sld [smem:[#allocation7 + $0x2]]  ;;  %s111_s11 = sld [smem:[#allocation7 + $0x3]] }
  0x32   :  { %s195_s12 = smov [#allocation9]  }
  0x33   :  { %s95_s13 = sshll.u32 %s195_s12, 4  ;;  %s96_s13 = int_to_ptr.vmem [resolvable:$true] %s95_s13 }
  0x34   :  { %v54_v1 = vstv %s53_s5  ;;  %v63_v4 = vstv %s106_s2  ;;  %s162_s14 = scalar_lea.vmem %s96_s13, 256  ;;  %p167_p5 = scmp.lt.s32.totalorder %s96_s13, %s96_s13 }
  0x35   :  { %v57_v2 = vstv %s56_s6  ;;  %v55_v3 = vmul.f32 %v54_v1, %v52_v0  ;;  %v66_v5 = vstv %s107_s7  ;;  %v64_v6 = vmul.f32 %v63_v4, %v52_v0  ;;  %p163_p4 = scmp.ne.s32.totalorder %s96_s13, %s162_s14  ;;  %p168_p6 = scmp.lt.s32.totalorder %s162_s14, %s162_s14 }
  0x36   :  { %v72_v7 = vstv %s108_s8  ;;  %v81_v11 = vstv %s110_s10 }
  0x37   :  { %v75_v8 = vstv %s109_s9  ;;  %v58_v9 = vadd.f32 %v57_v2, %v55_v3  ;;  %v73_v10 = vmul.f32 %v72_v7, %v52_v0  ;;  %v84_v12 = vstv %s111_s11  ;;  %p169_p7 = por %p168_p6, %p167_p5 }
  0x38   :  { %v67_v13 = vadd.f32 %v66_v5, %v64_v6  ;;  %v82_v14 = vmul.f32 %v81_v11, %v52_v0 }
  0x39   :  { %v59_v15 = vmax.f32 %v58_v9, 0.34  ;;  %v76_v16 = vadd.f32 %v75_v8, %v73_v10  ;;  %p170_p8 = pnand %p169_p7, %p163_p4 }
  0x3a   :  { %v68_v17 = vmax.f32 %v67_v13, 0.34  ;;  %v85_v18 = vadd.f32 %v84_v12, %v82_v14 }
  0x3b   :  { %v60_v19 = vmin.f32 %v59_v15, 0.52  ;;  %v77_v20 = vmax.f32 %v76_v16, 0.34 }
  0x3c   :  { %v69_v21 = vmin.f32 %v68_v17, 0.52  ;;  %v86_v22 = vmax.f32 %v85_v18, 0.34 }
  0x3d   :  { %61 = vst [vmem:[#allocation9] sm:$0xf] %v60_v19  ;;  %v78_v23 = vmin.f32 %v77_v20, 0.52 }
  0x3e   :  { %70 = vst [vmem:[#allocation9 + $0x4] sm:$0xf] %v69_v21  ;;  %v87_v24 = vmin.f32 %v86_v22, 0.52 }
  0x3f   :  { %79 = vst [vmem:[#allocation9 + $0x8] sm:$0xf] %v78_v23 }
  0x40   :  { %88 = vst [vmem:[#allocation9 + $0xc] sm:$0xf] %v87_v24 }
  0x41   :  { %173 = shalt.err (!%p170_p8)
}
  0x42   :  { %s174_s17 = scalar_lea.hbm %s249_s3, 256 }
  0x43   :  { %p175_p9 = scmp.ne.s32.totalorder %s249_s3, %s174_s17  ;;  %p178_p10 = scmp.lt.u32.totalorder %s174_s17, %s249_s3 }
  0x45   :  { %p180_p11 = pnand %p178_p10, %p175_p9 }
  0x47   :  { %183 = shalt.err (!%p180_p11)
}
  0x48   :  { %98 = dma.vmem_to_hbm [thread:$0]  %s96_s13, 256, %s249_s3, [#allocation4]  }
  0x49   :  { %190 = dma.done.wait [#allocation4], 256  }
  0x4a   :  { %191 = vsyncadd [#allocation4], 4294967040 }
  0x4b   :  { %102 = vsyncpa [#allocation3], 1 }
  0x4c   :  { %103 = vsyncpa [#allocation4], 1 }
  0x4d   :  { %104 = vsyncpa [#allocation5], 1 }
  0x4e   :  { %105 = vsyncpa [#allocation8], 1 }

</bundles_post_ra>
